<compile_context>
chip_gen: v5e
topology: v5e:2x2
jax: 0.10.0
libtpu: 0.0.40
codegen_flags: <defaults>
</compile_context>

<pallas_src>
import math

import jax
import jax.numpy as jnp
from jax.experimental import pallas as pl
from jax.experimental.pallas import tpu as pltpu

_LANES = 128                 # lane width: full-width unmasked vector stores
_BLOCK_BYTES = 2 << 20       # <= 2 MiB per block (8 MiB double-buffered in+out)
_MIN_SPLIT_BYTES = 1 << 20   # only split across >=2 grid steps if blocks >= 1 MiB
_SINGLE_BLOCK_BYTES = 4 << 20  # non-lane-aligned path: single VMEM block budget


def _identity_kernel(x_ref, o_ref):
    # Pure pass-through: the base model defines no computation.
    o_ref[...] = x_ref[...]


def _round_up(n, m):
    return ((n + m - 1) // m) * m


def _pallas_identity_impl(x):
    """Identity copy as a lane-dense, tiled Pallas kernel (no pad/slice passes)."""
    shape = x.shape
    total = math.prod(shape)
    itemsize = jnp.dtype(x.dtype).itemsize
    bytes_total = total * itemsize

    if total % _LANES == 0:
        # Common case: element count is a multiple of the lane width.  Flatten
        # to a (rows, 128) slab — a free (bitcast) reshape under jit — and tile
        # over rows.  No padding, no post-slice.
        rows = total // _LANES

        max_block_rows = max(8, (_BLOCK_BYTES // (_LANES * itemsize)) // 8 * 8)
        if bytes_total >= 2 * _MIN_SPLIT_BYTES:
            # Large enough to split: >= 2 grid steps so both v7x TensorCores
            # participate, each block a multiple of 8 sublanes.
            block_rows = min(max_block_rows, _round_up(pl.cdiv(rows, 2), 8))
        else:
            # Small tensor: one full-extent block (always a legal block shape).
            block_rows = rows

        grid = (pl.cdiv(rows, block_rows),)
        x2d = x.reshape(rows, _LANES)

        out2d = pl.pallas_call(
            _identity_kernel,
            out_shape=jax.ShapeDtypeStruct((rows, _LANES), x.dtype),
            grid=grid,
            in_specs=[pl.BlockSpec((block_rows, _LANES), lambda i: (i, 0))],
            out_specs=pl.BlockSpec((block_rows, _LANES), lambda i: (i, 0)),
            compiler_params=pltpu.CompilerParams(
                dimension_semantics=("parallel",)),
        )(x2d)
        return out2d.reshape(shape)

    # Rare path: element count not a multiple of 128.  Keep the original
    # tensor shape (no pad / slice traffic); trailing dims at full extent are
    # always a legal block.  Tile over the leading axis only when large.
    if x.ndim >= 2 and x.shape[0] > 1 and bytes_total > _SINGLE_BLOCK_BYTES:
        lead = x.shape[0]
        block = (1,) + shape[1:]
        nrest = x.ndim - 1
        return pl.pallas_call(
            _identity_kernel,
            out_shape=jax.ShapeDtypeStruct(shape, x.dtype),
            grid=(lead,),
            in_specs=[pl.BlockSpec(block, lambda i: (i,) + (0,) * nrest)],
            out_specs=pl.BlockSpec(block, lambda i: (i,) + (0,) * nrest),
            compiler_params=pltpu.CompilerParams(
                dimension_semantics=("parallel",)),
        )(x)

    # Small (or 1-D) non-lane-aligned tensor: single full-extent VMEM block.
    return pl.pallas_call(
        _identity_kernel,
        out_shape=jax.ShapeDtypeStruct(shape, x.dtype),
    )(x)


# jit so reshape plumbing is fused/elided and the pallas_call is not dispatched
# as a chain of eager ops.
_pallas_identity = jax.jit(_pallas_identity_impl)


class BaseModelPallas:
    """JAX/Pallas mirror of the PyTorch BaseModel (abstract base class)."""

    def __init__(self, n_features, n_landmarks, obs_length, pred_length):
        self.n_features = n_features
        self.n_landmarks = n_landmarks
        self.obs_length = obs_length
        self.pred_length = pred_length
        self.total_length = obs_length + pred_length
        # Base class owns no parameters (matches nn.Module with no layers).
        self.params = {}

    def get_params(self):
        return sum(int(jnp.size(p)) for p in self.params.values())

    def __str__(self):
        return (f"BaseModelPallas(n_features={self.n_features}, "
                f"n_landmarks={self.n_landmarks}, "
                f"obs_length={self.obs_length}, "
                f"pred_length={self.pred_length})"
                f"\nTrainable parameters: {self.get_params()}")

    def forward(self, x, *, materialize_copy=False):
        """Identity pass-through.

        x: (batch, total_length, n_landmarks, n_features)

        Default: return x directly (zero HBM traffic — the optimal identity).
        materialize_copy=True: run the Pallas copy kernel (opt-in scaffolding
        for subclasses / tests that need the pallas_call path exercised).
        """
        b, t, l, f = x.shape
        assert t == self.total_length
        assert l == self.n_landmarks
        assert f == self.n_features
        if not materialize_copy:
            return x
        return _pallas_identity(x)

    __call__ = forward


if __name__ == "__main__":
    # Small shapes consistent with the module's hyper-parameters.
    n_features = 2
    n_landmarks = 4
    obs_length = 8
    pred_length = 8
    batch = 2

    model = BaseModelPallas(n_features, n_landmarks, obs_length, pred_length)

    key = jax.random.PRNGKey(0)
    x = jax.random.normal(
        key,
        (batch, model.total_length, n_landmarks, n_features),
        dtype=jnp.float32,
    )

    # Default forward: optimal identity (no kernel, no copy).
    y_fast = model(x)
    assert y_fast is x

    # Opt-in Pallas copy path (single full-extent block: 2 rows x 128 lanes).
    y = jax.block_until_ready(model(x, materialize_copy=True))
    assert y.shape == x.shape
    assert jnp.allclose(y, x)
    assert model.get_params() == 0  # matches PyTorch BaseModel.get_params()

    # Multi-block, lane-aligned path (2 MiB -> two 1 MiB parallel blocks).
    big_model = BaseModelPallas(16, 32, 64, 64)
    xb = jax.random.normal(
        jax.random.PRNGKey(1), (8, 128, 32, 16), dtype=jnp.float32)
    yb = jax.block_until_ready(big_model(xb, materialize_copy=True))
    assert yb.shape == xb.shape
    assert jnp.allclose(yb, xb)

    # Non-128-multiple element count (288 elems): full-extent block, no pad.
    odd_model = BaseModelPallas(3, 3, 8, 8)
    xo = jax.random.normal(
        jax.random.PRNGKey(2), (2, 16, 3, 3), dtype=jnp.float32)
    yo = jax.block_until_ready(odd_model(xo, materialize_copy=True))
    assert yo.shape == xo.shape
    assert jnp.allclose(yo, xo)

    print("KERNEL_OK")
</pallas_src>

<mosaic_0001>
module attributes {stable_mosaic.version = 11 : i64} {
  func.func @_identity_kernel(%arg0: i32, %arg1: memref<2x128xf32, #tpu.memory_space<vmem>>, %arg2: memref<2x128xf32, #tpu.memory_space<vmem>>) attributes {dimension_semantics = [#tpu.dimension_semantics<parallel>], iteration_bounds = array<i64: 1>, scalar_prefetch = 0 : i64, scratch_operands = 0 : i64, tpu.core_type = #tpu.core_type<tc>, window_params = [{transform_indices = @transform_0, window_bounds = array<i64: 2, 128>}, {transform_indices = @transform_1, window_bounds = array<i64: 2, 128>}]} {
    %c0 = arith.constant 0 : index
    %c0_0 = arith.constant 0 : index
    %0 = vector.load %arg1[%c0, %c0_0] : memref<2x128xf32, #tpu.memory_space<vmem>>, vector<2x128xf32>
    %c0_1 = arith.constant 0 : index
    %c0_2 = arith.constant 0 : index
    %1 = vector.load %arg2[%c0_1, %c0_2] : memref<2x128xf32, #tpu.memory_space<vmem>>, vector<2x128xf32>
    tpu.vector_store %arg2[%c0_1, %c0_2], %0 {strides = array<i32>} : memref<2x128xf32, #tpu.memory_space<vmem>>, vector<2x128xf32>,
    return
  }
  func.func @transform_0(%arg0: i32) -> (i32, i32) {
    %c0_i32 = arith.constant 0 : i32
    %c0_i32_0 = arith.constant 0 : i32
    return %arg0, %c0_i32 : i32, i32
  }
  func.func @transform_1(%arg0: i32) -> (i32, i32) {
    %c0_i32 = arith.constant 0 : i32
    %c0_i32_0 = arith.constant 0 : i32
    return %arg0, %c0_i32 : i32, i32
  }
}

</mosaic_0001>

<bundles_post_ra>
// kernel: _pallas_identity_impl.1
= control target key start
LH: loop header
LB: loop body
LE: loop exit
PB: predicated region body
PF: predicated region fallthrough
CT: control target
= control target key end

     0   :  { %s30_s0 = inlined_call_operand.vmem [shape: f32[2,128], index: 0, kind: input, shape index: {}]   ;;  %s31_s1 = inlined_call_operand.vmem [shape: f32[2,128], index: 1, kind: output, shape index: {}]  }
   0x1   :  { %v8_v0 = vld [vmem:[%s30_s0] sm:$0x3] }
   0x2   :  { %9 = vst [vmem:[%s31_s1] sm:$0x3] %v8_v0 }

</bundles_post_ra>
